<compile_context>
chip_gen: v7x
topology: tpu7x:2x2x1
jax: 0.10.0
libtpu: 0.0.40
codegen_flags: <defaults>
</compile_context>

<pallas_src>
import functools

import jax
import jax.numpy as jnp
import numpy as np
from jax.experimental import pallas as pl
from jax.experimental.pallas import tpu as pltpu


# ----------------------------------------------------------------------------
# Fused kernel.
#   Stage 1 (every grid step, pipelined):  e_tile = tanh(x_tile @ W_kn + b)
#   Stage 2 (last grid step only):
#     sim[i,j] = cos(e1[i], e2[j]);  logp = log_softmax(sim / T, axis=1)
#     loss     = sum_i -(1/|labels_i|) * sum_{s in labels_i} simpson(i,s) * logp[i,s]
#   The positive/simpson/count bookkeeping is pre-folded host-side into wmask[i,j].
# ----------------------------------------------------------------------------
def _fused_simcse_kernel(x_ref, w_ref, b_ref, wmask_ref, e_ref, loss_ref, e_full_ref,
                         *, inv_temp, batch, tm, mxu_bf16):
    i = pl.program_id(0)

    # ---- Stage 1: dense head on a TM-row tile of the stacked [cls1; cls2] input.
    x = x_ref[...]                                    # [TM, H]
    w = w_ref[...]                                    # [H_in, H_out] (MXU-natural K,N)
    if mxu_bf16:                                      # static flag, traced once
        x = x.astype(jnp.bfloat16)
        w = w.astype(jnp.bfloat16)
    y = jax.lax.dot_general(                          # x @ W_kn, no transpose anywhere
        x, w, dimension_numbers=(((1,), (0,)), ((), ())),
        preferred_element_type=jnp.float32)
    e_tile = jnp.tanh(y + b_ref[...])                 # [TM, H]  (VPU/EUP)
    e_ref[...] = e_tile.astype(e_ref.dtype)           # pipelined writeback to HBM

    row0 = pl.multiple_of(i * tm, tm)                 # sublane-aligned scratch offset
    e_full_ref[pl.ds(row0, tm), :] = e_tile           # keep full e resident in VMEM

    # ---- Stage 2: cosine similarity + log-softmax + contrastive loss (last step only).
    @pl.when(i == pl.num_programs(0) - 1)
    def _():
        e = e_full_ref[...]                           # [2B, H]
        e1 = e[:batch, :]                             # [B, H]
        e2 = e[batch:, :]                             # [B, H]

        # Per-norm eps clamp (documented delta vs torch's product clamp).
        eps_sq = jnp.float32(1e-16)                   # eps = 1e-8 in squared-norm space
        n1sq = jnp.sum(e1 * e1, axis=-1, keepdims=True)
        n2sq = jnp.sum(e2 * e2, axis=-1, keepdims=True)
        r1 = jax.lax.rsqrt(jnp.maximum(n1sq, eps_sq))   # EUP
        r2 = jax.lax.rsqrt(jnp.maximum(n2sq, eps_sq))
        e2n = e2 * r2                                 # [B, H]

        lhs, rhs = e1, e2n
        if mxu_bf16:
            lhs = lhs.astype(jnp.bfloat16)
            rhs = rhs.astype(jnp.bfloat16)
        g = jax.lax.dot_general(                      # G[i,j] = <e1_i, e2n_j>
            lhs, rhs, dimension_numbers=(((1,), (1,)), ((), ())),
            preferred_element_type=jnp.float32)       # [B, B]
        logits = (g * r1) * jnp.float32(inv_temp)     # cosine / temperature

        # Row log-softmax as logits - logsumexp(logits).
        row_max = jnp.max(logits, axis=1, keepdims=True)
        lse = row_max + jnp.log(
            jnp.sum(jnp.exp(logits - row_max), axis=1, keepdims=True))
        log_prob = logits - lse                       # [B, B]

        # wmask[i,j] = sum-over-duplicates of simpson(i,j) / len(labels[i]).
        per_row = jnp.sum(wmask_ref[...] * log_prob, axis=1, keepdims=True)  # [B, 1]
        loss_ref[...] = jnp.sum(-per_row, axis=0, keepdims=True)             # [1, 1]


@functools.partial(jax.jit, static_argnames=("temperature", "mxu_bf16"))
def simcse_forward(cls1, cls2, dense_w, dense_b, pos_weight, temperature,
                   mxu_bf16=False):
    """Fused SimCSE forward.  Returns (loss, e1, e2).

    cls1, cls2 : [B, H] encoder CLS embeddings for the two views.
    dense_w    : [H, H] nn.Linear weight (PyTorch layout, NOT transposed).
    dense_b    : [H]    nn.Linear bias.
    pos_weight : [B, B] host-precomputed pos_mask * simpson / count matrix.
    mxu_bf16   : cast MXU operands to bf16 (recommended at BERT scale; off for parity).
    """
    B, H = cls1.shape
    M = 2 * B
    x = jnp.concatenate([cls1, cls2], axis=0)         # [2B, H] -> one stacked MXU pass
    # Pre-transpose the per-step-constant weight to [K, N] = [H_in, H_out] so the MXU
    # sees a natural RHS (for a real training loop, store the param in this layout).
    w_kn = dense_w.T
    b2 = dense_b.reshape(1, H)

    # Row-tile size: biggest (8,128)-legal tile that divides 2B.
    if M % 128 == 0:
        TM = 128
    elif M % 8 == 0:
        TM = 8
    else:
        TM = M                                        # full-extent fallback
    num_tiles = M // TM

    flops = 2 * M * H * H + 2 * B * B * H
    transcendentals = M * H + B * B + 2 * B + B       # tanh + exp + rsqrt + log
    bytes_accessed = 4 * (2 * M * H + H * H + H + B * B + 1)

    kern = functools.partial(_fused_simcse_kernel,
                             inv_temp=float(1.0 / temperature),
                             batch=B, tm=TM, mxu_bf16=mxu_bf16)
    e, loss = pl.pallas_call(
        kern,
        out_shape=(
            jax.ShapeDtypeStruct((M, H), jnp.float32),
            jax.ShapeDtypeStruct((1, 1), jnp.float32),
        ),
        grid=(num_tiles,),
        in_specs=[
            pl.BlockSpec((TM, H), lambda i: (i, 0)),   # x: tiled over rows (pipelined)
            pl.BlockSpec((H, H), lambda i: (0, 0)),    # W_kn: resident across the grid
            pl.BlockSpec((1, H), lambda i: (0, 0)),    # bias
            pl.BlockSpec((B, B), lambda i: (0, 0)),    # folded positive-weight matrix
        ],
        out_specs=(
            pl.BlockSpec((TM, H), lambda i: (i, 0)),   # e: tiled writeback
            pl.BlockSpec((1, 1), lambda i: (0, 0)),    # loss: written at last step only
        ),
        scratch_shapes=[pltpu.VMEM((M, H), jnp.float32)],   # full e, VMEM-resident carry
        compiler_params=pltpu.CompilerParams(
            # "arbitrary": e-scratch carries across steps and the epilogue needs every
            # tile.  For v7x megacore, split the dense stage into its own "parallel"
            # pallas_call at scale.
            dimension_semantics=("arbitrary",),
            vmem_limit_bytes=32 * 1024 * 1024,
        ),
        cost_estimate=pl.CostEstimate(flops=flops,
                                      transcendentals=transcendentals,
                                      bytes_accessed=bytes_accessed),
    )(x, w_kn, b2, pos_weight)

    return loss[0, 0], e[:B], e[B:]


# ----------------------------------------------------------------------------
# Host-side (numpy, once per batch): fold positives, simpson weights and 1/count
# into a single [B, B] matrix so the kernel only does one multiply + reduce.
# ----------------------------------------------------------------------------
def simpson_coefficient(a, b):
    """|A ∩ B| / min(|A|, |B|) on python label sets."""
    a, b = set(a), set(b)
    m = min(len(a), len(b))
    return len(a & b) / m if m else 0.0


def build_positive_weight_matrix(label_list, labels, batch):
    rows, cols, vals = [], [], []
    for i in range(batch):
        cnt = len(labels[i])
        if cnt == 0:
            # torch reference would divide by zero; skip such rows defensively.
            continue
        inv = 1.0 / cnt
        for s in labels[i]:
            rows.append(i)
            cols.append(s)
            vals.append(simpson_coefficient(label_list[i], label_list[s]) * inv)
    w = np.zeros((batch, batch), np.float32)
    if rows:
        np.add.at(w, (np.asarray(rows), np.asarray(cols)),
                  np.asarray(vals, np.float32))
    return jnp.asarray(w)


# ----------------------------------------------------------------------------
# Pure-numpy float64 reference reproducing the torch forward() loop exactly.
# ----------------------------------------------------------------------------
def _reference(cls1, cls2, w, b, label_list, labels, temperature):
    c = np.concatenate(
        [np.asarray(cls1, np.float64), np.asarray(cls2, np.float64)], axis=0)
    w64 = np.asarray(w, np.float64)
    b64 = np.asarray(b, np.float64)
    e = np.tanh(c @ w64.T + b64)
    Bn = cls1.shape[0]
    e1, e2 = e[:Bn], e[Bn:]

    def cos(a, b_):
        return float(a @ b_) / max(np.linalg.norm(a) * np.linalg.norm(b_), 1e-8)

    loss = 0.0
    for i in range(Bn):
        denom = sum(np.exp(cos(e1[i], e2[j]) / temperature) for j in range(Bn))
        li = 0.0
        for s in labels[i]:
            simpson = simpson_coefficient(label_list[i], label_list[s])
            li += simpson * np.log(np.exp(cos(e1[i], e2[s]) / temperature) / denom)
        loss += -li / len(labels[i])
    return loss, e1, e2


# ----------------------------------------------------------------------------
# Main
# ----------------------------------------------------------------------------
if __name__ == "__main__":
    B = 8          # batch of sentence pairs
    H = 128        # hidden_size
    temperature = 0.05

    key = jax.random.PRNGKey(0)
    k_w, k_b, k_c1, k_c2 = jax.random.split(key, 4)

    # Deterministic "parameters" of self.dense (nn.Linear(H, H)): weight [H, H], bias [H]
    dense_w = jax.random.normal(k_w, (H, H), jnp.float32) * 0.02
    dense_b = jax.random.normal(k_b, (H,), jnp.float32) * 0.02

    # Synthetic encoder CLS outputs (stand-in for encoder(**tok).last_hidden_state[:, 0])
    cls1 = jax.random.normal(k_c1, (B, H), jnp.float32)
    cls2 = jax.random.normal(k_c2, (B, H), jnp.float32)

    # Deterministic synthetic label sets and positive-index lists
    label_list = [{i % 4, (i + 1) % 4, 10 + i} for i in range(B)]
    labels = [[i, (i + 1) % B] for i in range(B)]

    pos_weight = build_positive_weight_matrix(label_list, labels, B)

    loss, e1, e2 = simcse_forward(cls1, cls2, dense_w, dense_b, pos_weight,
                                  temperature, mxu_bf16=False)
    jax.block_until_ready((loss, e1, e2))

    assert e1.shape == (B, H) and e2.shape == (B, H)
    assert loss.shape == () and bool(jnp.isfinite(loss))

    # Parity check against the torch-style reference loop (float64 numpy).
    ref_loss, ref_e1, ref_e2 = _reference(
        cls1, cls2, dense_w, dense_b, label_list, labels, temperature)
    np.testing.assert_allclose(np.asarray(e1), ref_e1, rtol=1e-4, atol=1e-5)
    np.testing.assert_allclose(np.asarray(e2), ref_e2, rtol=1e-4, atol=1e-5)
    np.testing.assert_allclose(float(loss), ref_loss, rtol=2e-3, atol=1e-3)

    # Smoke-test the bf16-operand path (the BERT-scale configuration) as well.
    loss_bf16, _, _ = simcse_forward(cls1, cls2, dense_w, dense_b, pos_weight,
                                     temperature, mxu_bf16=True)
    jax.block_until_ready(loss_bf16)
    np.testing.assert_allclose(float(loss_bf16), ref_loss, rtol=5e-2, atol=5e-2)

    print("KERNEL_OK")
</pallas_src>

<mosaic_0001>
module attributes {stable_mosaic.version = 11 : i64} {
  func.func @_fused_simcse_kernel(%arg0: i32, %arg1: memref<8x128xf32, #tpu.memory_space<vmem>>, %arg2: memref<128x128xf32, #tpu.memory_space<vmem>>, %arg3: memref<1x128xf32, #tpu.memory_space<vmem>>, %arg4: memref<8x8xf32, #tpu.memory_space<vmem>>, %arg5: memref<8x128xf32, #tpu.memory_space<vmem>>, %arg6: memref<1x1xf32, #tpu.memory_space<vmem>>, %arg7: memref<16x128xf32, #tpu.memory_space<vmem>>) attributes {dimension_semantics = [#tpu.dimension_semantics<arbitrary>], iteration_bounds = array<i64: 2>, scalar_prefetch = 0 : i64, scratch_operands = 1 : i64, tpu.core_type = #tpu.core_type<tc>, window_params = [{transform_indices = @transform_0, window_bounds = array<i64: 8, 128>}, {pipeline_mode = #tpu.pipeline_mode<synchronous>, transform_indices = @transform_1, window_bounds = array<i64: 128, 128>}, {pipeline_mode = #tpu.pipeline_mode<synchronous>, transform_indices = @transform_2, window_bounds = array<i64: 1, 128>}, {pipeline_mode = #tpu.pipeline_mode<synchronous>, transform_indices = @transform_3, window_bounds = array<i64: 8, 8>}, {transform_indices = @transform_4, window_bounds = array<i64: 8, 128>}, {pipeline_mode = #tpu.pipeline_mode<synchronous>, transform_indices = @transform_5, window_bounds = array<i64: 1, 1>}]} {
    %c0 = arith.constant 0 : index
    %c0_0 = arith.constant 0 : index
    %0 = vector.load %arg1[%c0, %c0_0] : memref<8x128xf32, #tpu.memory_space<vmem>>, vector<8x128xf32>
    %c0_1 = arith.constant 0 : index
    %c0_2 = arith.constant 0 : index
    %1 = vector.load %arg2[%c0_1, %c0_2] : memref<128x128xf32, #tpu.memory_space<vmem>>, vector<128x128xf32>
    %cst = arith.constant dense<0.000000e+00> : vector<8x128xf32>
    %2 = tpu.matmul %0, %1, %cst {dimension_numbers = #tpu.dot_dimension_numbers<[1], [0], [0], [1], [0, 0, 1, 1], [], []>} : vector<8x128xf32>, vector<128x128xf32>, vector<8x128xf32> -> vector<8x128xf32>
    %c0_3 = arith.constant 0 : index
    %c0_4 = arith.constant 0 : index
    %3 = vector.load %arg3[%c0_3, %c0_4] : memref<1x128xf32, #tpu.memory_space<vmem>>, vector<1x128xf32>
    %4 = vector.broadcast %3 : vector<1x128xf32> to vector<8x128xf32>
    %5 = arith.addf %2, %4 : vector<8x128xf32>
    %6 = math.tanh %5 : vector<8x128xf32>
    %c0_5 = arith.constant 0 : index
    %c0_6 = arith.constant 0 : index
    %7 = vector.load %arg5[%c0_5, %c0_6] : memref<8x128xf32, #tpu.memory_space<vmem>>, vector<8x128xf32>
    tpu.vector_store %arg5[%c0_5, %c0_6], %6 {strides = array<i32>} : memref<8x128xf32, #tpu.memory_space<vmem>>, vector<8x128xf32>,
    %c8_i32 = arith.constant 8 : i32
    %8 = arith.muli %arg0, %c8_i32 : i32
    %9 = tpu.assume_multiple %8, 8 : i32
    %10 = arith.index_cast %9 : i32 to index
    %c0_7 = arith.constant 0 : index
    %11 = vector.load %arg7[%10, %c0_7] : memref<16x128xf32, #tpu.memory_space<vmem>>, vector<8x128xf32>
    tpu.vector_store %arg7[%10, %c0_7], %6 {strides = array<i32>} : memref<16x128xf32, #tpu.memory_space<vmem>>, vector<8x128xf32>,
    %c1_i32 = arith.constant 1 : i32
    %12 = arith.cmpi eq, %arg0, %c1_i32 : i32
    %13 = arith.extui %12 : i1 to i32
    %c0_i32 = arith.constant 0 : i32
    %14 = arith.cmpi ne, %13, %c0_i32 : i32
    scf.if %14 {
      %c0_8 = arith.constant 0 : index
      %c0_9 = arith.constant 0 : index
      %15 = vector.load %arg7[%c0_8, %c0_9] : memref<16x128xf32, #tpu.memory_space<vmem>>, vector<16x128xf32>
      %16 = vector.extract_strided_slice %15 {offsets = [0, 0], sizes = [8, 128], strides = [1, 1]} : vector<16x128xf32> to vector<8x128xf32>
      %17 = vector.extract_strided_slice %15 {offsets = [8, 0], sizes = [8, 128], strides = [1, 1]} : vector<16x128xf32> to vector<8x128xf32>
      %18 = arith.mulf %16, %16 : vector<8x128xf32>
      %cst_10 = arith.constant dense<0.000000e+00> : vector<8xf32>
      %19 = vector.multi_reduction <add>, %18, %cst_10 [1] : vector<8x128xf32> to vector<8xf32>
      %20 = vector.shape_cast %19 : vector<8xf32> to vector<8x1xf32>
      %21 = arith.mulf %17, %17 : vector<8x128xf32>
      %cst_11 = arith.constant dense<0.000000e+00> : vector<8xf32>
      %22 = vector.multi_reduction <add>, %21, %cst_11 [1] : vector<8x128xf32> to vector<8xf32>
      %23 = vector.shape_cast %22 : vector<8xf32> to vector<8x1xf32>
      %cst_12 = arith.constant 1.000000e-16 : f32
      %24 = vector.broadcast %cst_12 : f32 to vector<8x1xf32>
      %25 = arith.maximumf %20, %24 : vector<8x1xf32>
      %26 = math.rsqrt %25 : vector<8x1xf32>
      %cst_13 = arith.constant 1.000000e-16 : f32
      %27 = vector.broadcast %cst_13 : f32 to vector<8x1xf32>
      %28 = arith.maximumf %23, %27 : vector<8x1xf32>
      %29 = math.rsqrt %28 : vector<8x1xf32>
      %30 = vector.broadcast %29 : vector<8x1xf32> to vector<8x128xf32>
      %31 = arith.mulf %17, %30 : vector<8x128xf32>
      %cst_14 = arith.constant dense<0.000000e+00> : vector<8x8xf32>
      %32 = tpu.matmul %16, %31, %cst_14 {dimension_numbers = #tpu.dot_dimension_numbers<[1], [1], [0], [0], [0, 0, 1, 0], [], []>} : vector<8x128xf32>, vector<8x128xf32>, vector<8x8xf32> -> vector<8x8xf32>
      %33 = vector.broadcast %26 : vector<8x1xf32> to vector<8x8xf32>
      %34 = arith.mulf %32, %33 : vector<8x8xf32>
      %cst_15 = arith.constant 2.000000e+01 : f32
      %35 = vector.broadcast %cst_15 : f32 to vector<8x8xf32>
      %36 = arith.mulf %34, %35 : vector<8x8xf32>
      %cst_16 = arith.constant dense<0xFF800000> : vector<8xf32>
      %37 = vector.multi_reduction <maximumf>, %36, %cst_16 [1] : vector<8x8xf32> to vector<8xf32>
      %38 = vector.shape_cast %37 : vector<8xf32> to vector<8x1xf32>
      %39 = vector.broadcast %38 : vector<8x1xf32> to vector<8x8xf32>
      %40 = arith.subf %36, %39 : vector<8x8xf32>
      %41 = math.exp %40 : vector<8x8xf32>
      %cst_17 = arith.constant dense<0.000000e+00> : vector<8xf32>
      %42 = vector.multi_reduction <add>, %41, %cst_17 [1] : vector<8x8xf32> to vector<8xf32>
      %43 = vector.shape_cast %42 : vector<8xf32> to vector<8x1xf32>
      %44 = math.log %43 : vector<8x1xf32>
      %45 = arith.addf %38, %44 : vector<8x1xf32>
      %46 = vector.broadcast %45 : vector<8x1xf32> to vector<8x8xf32>
      %47 = arith.subf %36, %46 : vector<8x8xf32>
      %c0_18 = arith.constant 0 : index
      %c0_19 = arith.constant 0 : index
      %48 = vector.load %arg4[%c0_18, %c0_19] : memref<8x8xf32, #tpu.memory_space<vmem>>, vector<8x8xf32>
      %49 = arith.mulf %48, %47 : vector<8x8xf32>
      %cst_20 = arith.constant dense<0.000000e+00> : vector<8xf32>
      %50 = vector.multi_reduction <add>, %49, %cst_20 [1] : vector<8x8xf32> to vector<8xf32>
      %51 = vector.shape_cast %50 : vector<8xf32> to vector<8x1xf32>
      %cst_21 = arith.constant 0.000000e+00 : f32
      %52 = vector.broadcast %cst_21 : f32 to vector<8x1xf32>
      %53 = arith.subf %52, %51 : vector<8x1xf32>
      %cst_22 = arith.constant dense<0.000000e+00> : vector<1xf32>
      %54 = vector.multi_reduction <add>, %53, %cst_22 [0] : vector<8x1xf32> to vector<1xf32>
      %55 = vector.shape_cast %54 : vector<1xf32> to vector<1x1xf32>
      %c0_23 = arith.constant 0 : index
      %c0_24 = arith.constant 0 : index
      %56 = vector.load %arg6[%c0_23, %c0_24] : memref<1x1xf32, #tpu.memory_space<vmem>>, vector<1x1xf32>
      tpu.vector_store %arg6[%c0_23, %c0_24], %55 {strides = array<i32>} : memref<1x1xf32, #tpu.memory_space<vmem>>, vector<1x1xf32>,
    } else {
    }
    return
  }
  func.func @transform_0(%arg0: i32) -> (i32, i32) {
    %c0_i32 = arith.constant 0 : i32
    %c0_i32_0 = arith.constant 0 : i32
    return %arg0, %c0_i32 : i32, i32
  }
  func.func @transform_1(%arg0: i32) -> (i32, i32) {
    %c0_i32 = arith.constant 0 : i32
    %c0_i32_0 = arith.constant 0 : i32
    %c0_i32_1 = arith.constant 0 : i32
    return %c0_i32, %c0_i32_0 : i32, i32
  }
  func.func @transform_2(%arg0: i32) -> (i32, i32) {
    %c0_i32 = arith.constant 0 : i32
    %c0_i32_0 = arith.constant 0 : i32
    %c0_i32_1 = arith.constant 0 : i32
    return %c0_i32, %c0_i32_0 : i32, i32
  }
  func.func @transform_3(%arg0: i32) -> (i32, i32) {
    %c0_i32 = arith.constant 0 : i32
    %c0_i32_0 = arith.constant 0 : i32
    %c0_i32_1 = arith.constant 0 : i32
    return %c0_i32, %c0_i32_0 : i32, i32
  }
  func.func @transform_4(%arg0: i32) -> (i32, i32) {
    %c0_i32 = arith.constant 0 : i32
    %c0_i32_0 = arith.constant 0 : i32
    return %arg0, %c0_i32 : i32, i32
  }
  func.func @transform_5(%arg0: i32) -> (i32, i32) {
    %c0_i32 = arith.constant 0 : i32
    %c0_i32_0 = arith.constant 0 : i32
    %c0_i32_1 = arith.constant 0 : i32
    return %c0_i32, %c0_i32_0 : i32, i32
  }
}

</mosaic_0001>

<bundles_post_ra>
// kernel: simcse_forward.1
= control target key start
LH: loop header
LB: loop body
LE: loop exit
PB: predicated region body
PF: predicated region fallthrough
CT: control target
= control target key end

     0   :  { %11 = vsyncpa [#allocation4], 0  ;;  %s715_s18 = smov 0   ;;  %s818_s0 = inlined_call_operand.vmem [shape: f32[16,128], index: 0, kind: input, shape index: {}]   ;;  %s819_s1 = inlined_call_operand.vmem [shape: f32[128,128], index: 1, kind: input, shape index: {}]   ;;  %s820_s2 = inlined_call_operand.vmem [shape: f32[1,128], index: 2, kind: input, shape index: {}]   ;;  %s821_s3 = inlined_call_operand.vmem [shape: f32[8,8], index: 3, kind: input, shape index: {}]   ;;  %s822_s4 = inlined_call_operand.vmem [shape: f32[16,128], index: 4, kind: output, shape index: {0}]   ;;  %s823_s5 = inlined_call_operand.hbm [shape: f32[1,1], index: 5, kind: output, shape index: {1}]  }
   0x1 LB: > { %s721_s19 = sadd.s32 4294967295, %s677_s18   ;;  %p518_p0 = scmp.ge.s32.totalorder %s677_s18, 1  ;;  %s677_s18 = sphi %s715_s18, %s17_s18  }
   0x2   : > { %p185_p1 = scmp.lt.s32.totalorder %s677_s18, 3 }
   0x4   : > { %p186_p2 = pnand %p518_p0, %p185_p1 }
   0x5   : > { %v220_v0 = vld [vmem:[%s819_s1] sm:$0xff] (!%p186_p2)  ;;  %v221_v1 = vld [vmem:[%s819_s1 + $0x8] sm:$0xff] (!%p186_p2)  ;;  %v222_v2 = vld [vmem:[%s819_s1 + $0x10] sm:$0xff] (!%p186_p2)  ;;  %v679_v3 = vmov (!%p186_p2), 0.0|0.0   ;;  %vm680_vm0 = vmmov (!%p186_p2), 0   ;;  %v681_v6 = vmov (!%p186_p2), 0.0  }
   0x6   : > { %189 = sbr.rel (%p186_p2) target bundleno = 1153 (0x481), region = 36  ;;  %587 = vmatprep.subr.bf16.mxu0 (!%p186_p2), %v679_v3  ;;  %v588_v4 = vpack.c.bf16 (!%p186_p2), %v221_v1, %v220_v0  ;;  %v223_v5 = vld [vmem:[%s819_s1 + $0x18] sm:$0xff] (!%p186_p2)  ;;  %579 = vmatprep.mubr.msk.f32.mxu0 (!%p186_p2), %vm680_vm0, %v681_v6  ;;  %v224_v8 = vld [vmem:[%s819_s1 + $0x20] sm:$0xff] (!%p186_p2)  ;;  %v225_v9 = vld [vmem:[%s819_s1 + $0x28] sm:$0xff] (!%p186_p2)  ;;  %p211_p3 = scmp.lt.s32.totalorder (!%p186_p2), %s721_s19, 1 }
   0x7   : > { %v591_v7 = vpack.c.bf16 (!%p186_p2), %v223_v5, %v222_v2  ;;  %v594_v10 = vpack.c.bf16 (!%p186_p2), %v225_v9, %v224_v8  ;;  %v226_v11 = vld [vmem:[%s819_s1 + $0x30] sm:$0xff] (!%p186_p2)  ;;  %v227_v12 = vld [vmem:[%s819_s1 + $0x38] sm:$0xff] (!%p186_p2)  ;;  %v228_v14 = vld [vmem:[%s819_s1 + $0x40] sm:$0xff] (!%p186_p2)  ;;  %s522_s11 = sshll.u32 (!%p186_p2), %s721_s19, 3  ;;  %p523_p4 = scmp.ne.s32.totalorder (!%p186_p2), %s721_s19, 1 }
   0x8   : > { %589 = vmatpush3.bf16.msra.mxu0 (!%p186_p2), %v588_v4  ;;  %v597_v13 = vpack.c.bf16 (!%p186_p2), %v227_v12, %v226_v11  ;;  %v229_v15 = vld [vmem:[%s819_s1 + $0x48] sm:$0xff] (!%p186_p2)  ;;  %v230_v17 = vld [vmem:[%s819_s1 + $0x50] sm:$0xff] (!%p186_p2)  ;;  %v231_v18 = vld [vmem:[%s819_s1 + $0x58] sm:$0xff] (!%p186_p2)  ;;  %s316_s15 = scalar_lea.vmem (!%p186_p2), [#allocation2], %s522_s11 }
   0x9   : > { %590 = vmatprep.subr.bf16.mxu0 (!%p186_p2), %v679_v3  ;;  %v600_v16 = vpack.c.bf16 (!%p186_p2), %v229_v15, %v228_v14  ;;  %v603_v19 = vpack.c.bf16 (!%p186_p2), %v231_v18, %v230_v17  ;;  %v232_v20 = vld [vmem:[%s819_s1 + $0x60] sm:$0xff] (!%p186_p2)  ;;  %v233_v21 = vld [vmem:[%s819_s1 + $0x68] sm:$0xff] (!%p186_p2)  ;;  %v234_v23 = vld [vmem:[%s819_s1 + $0x70] sm:$0xff] (!%p186_p2) }
   0xa   : > { %v606_v22 = vpack.c.bf16 (!%p186_p2), %v233_v21, %v232_v20  ;;  %v235_v24 = vld [vmem:[%s819_s1 + $0x78] sm:$0xff] (!%p186_p2)  ;;  %v521_v27 = vld [vmem:[%s820_s2] ss:$0 sm:$0xff] (!%p186_p2) }
   0xb   : > { %v609_v25 = vpack.c.bf16 (!%p186_p2), %v235_v24, %v234_v23 }
   0xc   : > { %592 = vmatpush3.bf16.msra.mxu0 (!%p186_p2), %v591_v7 }
   0xd   : > { %593 = vmatprep.subr.bf16.mxu0 %v679_v3  ;;  %s212_s25 = scalar_select %p211_p3, %s721_s19, 1 }
   0xe   : > { %v682_v34 = vmov (!%p523_p4), 0.0   ;;  %vm683_vm1 = vmmov (!%p523_p4), 0   ;;  %vm407_vm2 = vcmask (!%p523_p4), 64512   ;;  %v421_v58 = vld [vmem:[%s821_s3] sm:$0xff] (!%p523_p4)  ;;  %vm433_vm3 = vcmask (!%p523_p4), 0  }
   0xf   : > { %s519_s30 = sshll.u32 %s212_s25, 3 }
  0x10   : > { %595 = vmatpush3.bf16.msra.mxu0 %v594_v10  ;;  %s214_s8 = scalar_lea.vmem %s818_s0, %s519_s30  ;;  %s218_s14 = scalar_lea.vmem %s822_s4, %s519_s30 }
  0x11   : > { %596 = vmatprep.subr.bf16.mxu0 %v679_v3  ;;  %v219_v26 = vld [vmem:[%s214_s8] sm:$0xff] }
  0x14   : > { %598 = vmatpush3.bf16.msra.mxu0 %v597_v13 }
  0x15   : > { %599 = vmatprep.subr.bf16.mxu0 %v679_v3 }
  0x18   : > { %601 = vmatpush3.bf16.msra.mxu0 %v600_v16 }
  0x19   : > { %602 = vmatprep.subr.bf16.mxu0 %v679_v3 }
  0x1c   : > { %604 = vmatpush3.bf16.msra.mxu0 %v603_v19 }
  0x1d   : > { %605 = vmatprep.subr.bf16.mxu0 %v679_v3 }
  0x20   : > { %607 = vmatpush3.bf16.msra.mxu0 %v606_v22 }
  0x21   : > { %608 = vmatprep.subr.bf16.mxu0 %v679_v3 }
  0x24   : > { %610 = vmatpush3.bf16.msra.mxu0 %v609_v25 }
  0x25   : > { %582 = vmatprep.subr.mxu0 (!%p523_p4), %v682_v34 }
  0x27   : > { %580 = vmatmul.mubr.f32.vlgmr.msra.gmra.mrb[0].mxu0 %v219_v26 }
  0x28   : > { %584 = vmatprep.mubr.msk.f32.mxu0 (!%p523_p4), %vm683_vm1, %v682_v34 }
  0xfa   : > { %v309_v28 = vpop.f32.mrb[0].mxu0 }
  0xfb   : > { %v310_v29 = vadd.f32 %v521_v27, %v309_v28  ;;  %v581_v30 = vpop.f32.mrb[1].mxu0 }
  0xfd   : > { %631 = vtanh.f32 %v310_v29 }
 0x102   : > { %321 = sbr.rel (%p523_p4) target bundleno = 1128 (0x468), region = 40 }
 0x107   : > { %v632_v31 = vpop.eup %631 }
 0x108   : > { %314 = vst [vmem:[%s218_s14] sm:$0xff] %v632_v31  ;;  %317 = vst [vmem:[%s316_s15] sm:$0xff] %v632_v31 }
 0x10f   : > { %v323_v32 = vld [vmem:[#allocation2 + $0x8] sm:$0xff]  ;;  %v322_v35 = vld [vmem:[#allocation2] sm:$0xff] }
 0x110   : > { %v327_v33 = vmul.f32 %v323_v32, %v323_v32  ;;  %v324_v36 = vmul.f32 %v322_v35, %v322_v35 }
 0x112   : > { %328 = vadd.xlane.f32.xlu0 %v327_v33 }
 0x116   : > { %325 = vadd.xlane.f32.xlu0 %v324_v36 }
 0x19f   : > { %v329_v37 = vpop.xlane.xlu0 %328 }
 0x1a0   : > { %v332_v38 = vmax.f32 %v329_v37, 1e-16 }
 0x1a2   : > { %633 = vrsqrt.f32 %v332_v38 }
 0x1a3   : > { %v326_v41 = vpop.xlane.xlu0 %325 }
 0x1a4   : > { %v330_v42 = vmax.f32 %v326_v41, 1e-16 }
 0x1a6   : > { %635 = vrsqrt.f32 %v330_v42 }
 0x1ac   : > { %v634_v39 = vpop.eup %633 }
 0x1ad   : > { %v334_v40 = vmul.f32 %v634_v39, %v323_v32 }
 0x1af   : > { %583 = vmatpush3.xpose.msra.mxu0 %v334_v40 }
 0x1b0   : > { %v636_v43 = vpop.eup %635 }
 0x1b2   : > { %585 = vmatmul.mubr.f32.vlgmr.msra.gmra.mrb[0].mxu0 %v322_v35 }
 0x285   : > { %v401_v44 = vpop.f32.mrb[0].mxu0 }
 0x286   : > { %v405_v45 = vmul.f32 %v636_v43, %v401_v44  ;;  %v586_v46 = vpop.f32.mrb[1].mxu0 }
 0x288   : > { %v406_v47 = vmul.f32 20.0, %v405_v45 }
 0x28a   : > { %v408_v48 = vsel %vm407_vm2, %v406_v47, -inf }
 0x28b   : > { %409 = vmax.xlane.f32.xlu1 %v408_v48 }
 0x318   : > { %v410_v49 = vpop.xlane.xlu1 %409 }
 0x319   : > { %v411_v50 = vsub.f32 %v406_v47, %v410_v49 }
 0x31b   : > { %v412_v51 = vmul.f32 1.442695, %v411_v50 }
 0x31d   : > { %637 = vpow2.f32 %v412_v51 }
 0x327   : > { %v638_v52 = vpop.eup %637 }
 0x328   : > { %v414_v53 = vsel %vm407_vm2, %v638_v52, 0.0 }
 0x329   : > { %415 = vadd.xlane.f32.xlu1 %v414_v53 }
 0x3b6   : > { %v416_v54 = vpop.xlane.xlu1 %415 }
 0x3b7   : > { %639 = vlog2.f32 %v416_v54 }
 0x3c1   : > { %v640_v55 = vpop.eup %639 }
 0x3c2   : > { %v418_v56 = vmul.f32 0.6931472, %v640_v55 }
 0x3c4   : > { %v419_v57 = vadd.f32 %v418_v56, %v410_v49 }
 0x3c6   : > { %v420_v59 = vsub.f32 %v406_v47, %v419_v57 }
 0x3c8   : > { %v422_v60 = vmul.f32 %v421_v58, %v420_v59 }
 0x3ca   : > { %v423_v61 = vsel %vm407_vm2, %v422_v60, 0.0 }
 0x3cb   : > { %424 = vadd.xlane.f32.xlu0 %v423_v61 }
 0x458   : > { %v425_v62 = vpop.xlane.xlu0 %424 }
 0x459   : > { %v426_v63 = vsub.f32 0.0, %v425_v62 }
 0x45b   : > { %v427_v0 = vrot.slane %v426_v63, 4 }
 0x45d   : > { %v428_v1 = vadd.f32 %v427_v0, %v426_v63 }
 0x45f   : > { %v429_v2 = vrot.slane %v428_v1, 2 }
 0x461   : > { %v430_v3 = vadd.f32 %v429_v2, %v428_v1 }
 0x463   : > { %v431_v4 = vrot.slane %v430_v3, 1 }
 0x465   : > { %v432_v5 = vadd.f32 %v431_v4, %v430_v3 }
 0x467   : > { %434 = vst.msk [vmem:[#allocation3] sm:$0x1] %vm433_vm3, %v432_v5 }
 0x468 PF: > { %p615_p5 = scmp.eq.s32.totalorder %s721_s19, 1  ;;  %s684_s20 = smov [#allocation3]  }
 0x469   : > { %s449_s21 = sshll.u32 %s684_s20, 4  ;;  %s450_s21 = int_to_ptr.vmem [resolvable:$true] %s449_s21 }
 0x46a   : > { %s641_s22 = scalar_lea.vmem %s450_s21, 16  ;;  %s647_s23 = scalar_lea.vmem %s450_s21, 32 }
 0x46b   : > { %p642_p6 = scmp.ne.s32.totalorder %s450_s21, %s641_s22  ;;  %p648_p9 = scmp.lt.s32.totalorder %s450_s21, %s450_s21 }
 0x46c   : > { %p649_p10 = scmp.lt.s32.totalorder %s647_s23, %s641_s22 }
 0x46d   : > { %p643_p7 = pnand %p642_p6, %p615_p5 }
 0x46e   : > { %p650_p11 = por %p649_p10, %p648_p9 }
 0x46f   : > { %p644_p8 = pneg %p643_p7 }
 0x471   : > { %p651_p12 = pnand %p650_p11, %p644_p8 }
 0x473   : > { %654 = shalt.err (!%p651_p12)
}
 0x474   : > { %s655_s26 = scalar_lea.hbm %s823_s5, 16 }
 0x475   : > { %p656_p13 = scmp.ne.s32.totalorder %s823_s5, %s655_s26  ;;  %p661_p2 = scmp.lt.u32.totalorder %s655_s26, %s823_s5 }
 0x477   : > { %p657_p0 = pnand %p656_p13, %p615_p5 }
 0x479   : > { %p658_p1 = pneg %p657_p0 }
 0x47b   : > { %p663_p3 = pnand %p661_p2, %p658_p1 }
 0x47d   : > { %666 = shalt.err (!%p663_p3)
}
 0x47e   : > { %612 = dma.vmem_to_hbm [thread:$0]  (%p615_p5), %s450_s21, 16, %s823_s5, [#allocation4]  }
 0x47f   : > { %672 = dma.done.wait (%p615_p5), [#allocation4], 16  }
 0x480   : > { %674 = vsyncadd (%p615_p5), [#allocation4], 4294967280 }
 0x481 PF: > { %s17_s18 = sadd.s32 1, %s677_s18  }
 0x482   : > { %p14_p4 = scmp.ge.s32.totalorder %s17_s18, 4  }
 0x484   :  { %16 = sbr.rel (!%p14_p4) target bundleno = 1 (0x1), region = 80 }
 0x48b   :  { %469 = vsyncpa [#allocation4], 1 }
 0x48c   :  { %471 = vsyncpa [#allocation4 + $0x1], 1 }

</bundles_post_ra>
